<compile_context>
chip_gen: v7x
topology: tpu7x:2x2x1
jax: 0.10.0
libtpu: 0.0.40
codegen_flags: <defaults>
</compile_context>

<pallas_src>
import functools

import jax
import jax.numpy as jnp
from jax.experimental import pallas as pl
from jax.experimental.pallas import tpu as pltpu


def _proj_kernel(x_ref, w_ref, b_ref, h_ref, f_ref):
    """h = x @ [W_0|...|W_{H-1}] ; f = h @ [B1|B2] (block-diag per-head attn projections)."""
    h = jnp.dot(x_ref[...], w_ref[...], preferred_element_type=jnp.float32)  # (tile, H*Fout)
    f = jnp.dot(h, b_ref[...], preferred_element_type=jnp.float32)           # (tile, 2H)
    h_ref[...] = h.astype(h_ref.dtype)
    f_ref[...] = f.astype(f_ref.dtype)


def _attn_kernel(f1_ref, f2t_ref, adj_ref, h_ref, out_ref, rowsum_ref, acc_ref,
                 *, alpha, nheads, fout, mxu_dtype):
    """Flash-style masked GAT attention: stream over j tiles, accumulate in VMEM scratch."""
    j = pl.program_id(1)

    @pl.when(j == 0)
    def _():
        rowsum_ref[...] = jnp.zeros_like(rowsum_ref)
        acc_ref[...] = jnp.zeros_like(acc_ref)

    f1 = f1_ref[...]                        # (tile_i, H)    a1 . h_head[i]
    f2 = f2t_ref[...]                       # (H, tile_j)    a2 . h_head[j] (pre-transposed)
    hj = h_ref[...].astype(mxu_dtype)       # (tile_j, H*Fout) value rows, all heads
    mask = adj_ref[...] != 0                # (tile_i, tile_j) int8 adjacency -> bool

    rsum_parts = []
    acc_parts = []
    for head in range(nheads):              # static loop, traced once (H is small)
        s = f1[:, head:head + 1] + f2[head:head + 1, :]        # (tile_i, tile_j)
        s = jnp.where(s > 0, s, alpha * s)                      # LeakyReLU(alpha)
        e = jnp.where(mask, jnp.exp(-s), 0.0)                   # masked edge weights
        rsum_parts.append(jnp.sum(e, axis=-1, keepdims=True))   # (tile_i, 1)
        acc_parts.append(jnp.dot(e.astype(mxu_dtype),
                                 hj[:, head * fout:(head + 1) * fout],
                                 preferred_element_type=jnp.float32))
    # Single lane-dense scratch update per grid step.
    rowsum_ref[...] += jnp.concatenate(rsum_parts, axis=-1)     # (tile_i, H)
    acc_ref[...] += jnp.concatenate(acc_parts, axis=-1)         # (tile_i, H*Fout)

    @pl.when(j == pl.num_programs(1) - 1)
    def _():
        # approx=True offloads to the EUP; exact keeps parity with the f32 reference.
        inv = pl.reciprocal(rowsum_ref[...], approx=False)      # (tile_i, H)
        outs = []
        for head in range(nheads):
            hp = acc_ref[:, head * fout:(head + 1) * fout] * inv[:, head:head + 1]
            outs.append(jnp.where(hp > 0, hp, jnp.expm1(hp)))   # ELU
        # One lane-dense (tile_i, H*Fout) store, already in torch.cat(dim=1) layout.
        out_ref[...] = jnp.concatenate(outs, axis=-1).astype(out_ref.dtype)


def graph_attention_layer(x, adj, W, a1, a2, *, alpha=0.2, concat=True,
                          tile_i=128, tile_j=128, mxu_dtype=jnp.float32):
    """Multi-head sparse-GAT forward (inference). Returns (h, adj)."""
    N, Fin = x.shape
    H, _, Fout = W.shape
    HF = H * Fout

    tile_i = N if N <= tile_i else tile_i
    tile_j = N if N <= tile_j else tile_j
    assert N % tile_i == 0 and N % tile_j == 0, "N must be divisible by the tile sizes"
    assert tile_j == N or tile_j % 128 == 0        # lane axis of the adj block
    assert tile_i == N or tile_i % 8 == 0          # sublane axis

    # Head-major fused weights: columns [h*Fout:(h+1)*Fout] belong to head h
    # (matches torch.cat([...], dim=1), so the kernel output needs no transpose).
    W_cat = jnp.transpose(W, (1, 0, 2)).reshape(Fin, HF).astype(x.dtype)
    # Block-diagonal attention projections: f1 = h @ B1, f2 = h @ B2, fused into one
    # lane-dense matmul h @ [B1|B2] instead of 2*H separate (N,1)-wide MXU matmuls.
    #   B1[h*Fout+f, g] = a1[h, f] * (h == g)
    eye = jnp.eye(H, dtype=x.dtype)
    B1 = (a1[:, :, None] * eye[:, None, :]).reshape(HF, H)
    B2 = (a2[:, :, None] * eye[:, None, :]).reshape(HF, H)
    B = jnp.concatenate([B1, B2], axis=-1)                      # (HF, 2H)

    # ---- kernel 1: fused projection (h and all per-head attention scalars) ------
    h_all, f_all = pl.pallas_call(
        _proj_kernel,
        out_shape=(jax.ShapeDtypeStruct((N, HF), jnp.float32),
                   jax.ShapeDtypeStruct((N, 2 * H), jnp.float32)),
        grid=(N // tile_i,),
        in_specs=[
            pl.BlockSpec((tile_i, Fin), lambda r: (r, 0)),
            pl.BlockSpec((Fin, HF), lambda r: (0, 0)),
            pl.BlockSpec((HF, 2 * H), lambda r: (0, 0)),
        ],
        out_specs=(pl.BlockSpec((tile_i, HF), lambda r: (r, 0)),
                   pl.BlockSpec((tile_i, 2 * H), lambda r: (r, 0))),
        compiler_params=pltpu.CompilerParams(dimension_semantics=("parallel",)),
    )(x, W_cat, B)

    f1 = f_all[:, :H]                     # (N, H)  a1 . h_head[i]
    f2t = f_all[:, H:].T                  # (H, N)  pre-transposed -> no in-kernel transpose
    adj_i8 = (adj != 0).astype(jnp.int8)  # 4x less HBM traffic for the O(N^2) operand
    # TODO(synk): in a real pipeline adj should already be stored as int8/bool.

    # ---- kernel 2: flash-style masked attention, streaming over j tiles ---------
    kernel = functools.partial(_attn_kernel, alpha=alpha, nheads=H, fout=Fout,
                               mxu_dtype=mxu_dtype)
    heads_out = pl.pallas_call(
        kernel,
        out_shape=jax.ShapeDtypeStruct((N, HF), jnp.float32),
        grid=(N // tile_i, N // tile_j),
        in_specs=[
            pl.BlockSpec((tile_i, H), lambda i, j: (i, 0)),        # f1 rows (query tile)
            pl.BlockSpec((H, tile_j), lambda i, j: (0, j)),        # f2^T cols (key tile)
            pl.BlockSpec((tile_i, tile_j), lambda i, j: (i, j)),   # int8 adjacency tile
            pl.BlockSpec((tile_j, HF), lambda i, j: (j, 0)),       # value rows, all heads
        ],
        out_specs=pl.BlockSpec((tile_i, HF), lambda i, j: (i, 0)),
        scratch_shapes=[pltpu.VMEM((tile_i, H), jnp.float32),      # rowsum accumulator
                        pltpu.VMEM((tile_i, HF), jnp.float32)],    # weighted-sum accumulator
        compiler_params=pltpu.CompilerParams(
            dimension_semantics=("parallel", "arbitrary")),
    )(f1, f2t, adj_i8, h_all)

    if concat:
        h_out = heads_out                                  # already head-major concatenated
    else:
        h_out = heads_out.reshape(N, H, Fout).mean(axis=1)
    # TODO(synk): F.dropout / nn.Dropout are identity in eval mode, so they are omitted.
    return h_out, adj


def _reference(x, adj, W, a1, a2, *, alpha=0.2, concat=True):
    """Pure-JAX reference mirroring the PyTorch math (eval mode)."""
    outs = []
    for hI in range(W.shape[0]):
        h = x @ W[hI]
        s = (h @ a1[hI][:, None]) + (h @ a2[hI][:, None]).T
        s = jnp.where(s > 0, s, alpha * s)
        e = jnp.exp(-s) * adj
        rowsum = e.sum(-1, keepdims=True)
        hp = (e @ h) / rowsum
        outs.append(jnp.where(hp > 0, hp, jnp.expm1(hp)))
    if concat:
        return jnp.concatenate(outs, axis=1)
    return jnp.mean(jnp.stack(outs, axis=-1), axis=-1)


if __name__ == "__main__":
    # Small but tiling-exercising shapes: N=256 nodes -> 2x2 grid of 128x128 tiles,
    # input_dim=16, output_dim=16, nheads=4, alpha=0.2.
    N, Fin, Fout, H = 256, 16, 16, 4
    alpha = 0.2
    gain = 1.414

    key = jax.random.PRNGKey(0)
    k_x, k_adj, k_w, k_a = jax.random.split(key, 4)

    x = jax.random.normal(k_x, (N, Fin), dtype=jnp.float32)

    # Random sparse-ish adjacency with self-loops (so no zero row-sums -> no NaNs).
    adj = (jax.random.uniform(k_adj, (N, N)) < 0.2).astype(jnp.float32)
    adj = jnp.maximum(adj, jnp.eye(N, dtype=jnp.float32))

    # xavier_normal_(gain=1.414): std = gain * sqrt(2 / (fan_in + fan_out))
    w_std = gain * (2.0 / (Fin + Fout)) ** 0.5
    a_std = gain * (2.0 / (1 + 2 * Fout)) ** 0.5
    W = w_std * jax.random.normal(k_w, (H, Fin, Fout), dtype=jnp.float32)
    a_full = a_std * jax.random.normal(k_a, (H, 1, 2 * Fout), dtype=jnp.float32)
    a1 = a_full[:, 0, :Fout]   # (H, Fout)
    a2 = a_full[:, 0, Fout:]   # (H, Fout)

    h_out, adj_out = graph_attention_layer(x, adj, W, a1, a2, alpha=alpha, concat=True)
    h_out = jax.block_until_ready(h_out)

    ref = _reference(x, adj, W, a1, a2, alpha=alpha, concat=True)
    assert h_out.shape == (N, H * Fout)
    # Tolerance covers MXU default-precision (bf16-pass) rounding and the different
    # accumulation order of the j-tiled kernel vs the one-shot XLA reference.
    err = float(jnp.max(jnp.abs(h_out - ref)))
    assert err < 2e-3, f"mismatch vs reference: max abs err = {err}"

    print("KERNEL_OK")
</pallas_src>

<mosaic_0001>
module attributes {stable_mosaic.version = 11 : i64} {
  func.func @_proj_kernel(%arg0: i32, %arg1: memref<128x16xf32, #tpu.memory_space<vmem>>, %arg2: memref<16x64xf32, #tpu.memory_space<vmem>>, %arg3: memref<64x8xf32, #tpu.memory_space<vmem>>, %arg4: memref<128x64xf32, #tpu.memory_space<vmem>>, %arg5: memref<128x8xf32, #tpu.memory_space<vmem>>) attributes {dimension_semantics = [#tpu.dimension_semantics<parallel>], iteration_bounds = array<i64: 2>, scalar_prefetch = 0 : i64, scratch_operands = 0 : i64, tpu.core_type = #tpu.core_type<tc>, window_params = [{transform_indices = @transform_0, window_bounds = array<i64: 128, 16>}, {pipeline_mode = #tpu.pipeline_mode<synchronous>, transform_indices = @transform_1, window_bounds = array<i64: 16, 64>}, {pipeline_mode = #tpu.pipeline_mode<synchronous>, transform_indices = @transform_2, window_bounds = array<i64: 64, 8>}, {transform_indices = @transform_3, window_bounds = array<i64: 128, 64>}, {transform_indices = @transform_4, window_bounds = array<i64: 128, 8>}]} {
    %c0 = arith.constant 0 : index
    %c0_0 = arith.constant 0 : index
    %0 = vector.load %arg1[%c0, %c0_0] : memref<128x16xf32, #tpu.memory_space<vmem>>, vector<128x16xf32>
    %c0_1 = arith.constant 0 : index
    %c0_2 = arith.constant 0 : index
    %1 = vector.load %arg2[%c0_1, %c0_2] : memref<16x64xf32, #tpu.memory_space<vmem>>, vector<16x64xf32>
    %cst = arith.constant dense<0.000000e+00> : vector<128x64xf32>
    %2 = tpu.matmul %0, %1, %cst {dimension_numbers = #tpu.dot_dimension_numbers<[1], [0], [0], [1], [0, 0, 1, 1], [], []>} : vector<128x16xf32>, vector<16x64xf32>, vector<128x64xf32> -> vector<128x64xf32>
    %c0_3 = arith.constant 0 : index
    %c0_4 = arith.constant 0 : index
    %3 = vector.load %arg3[%c0_3, %c0_4] : memref<64x8xf32, #tpu.memory_space<vmem>>, vector<64x8xf32>
    %cst_5 = arith.constant dense<0.000000e+00> : vector<128x8xf32>
    %4 = tpu.matmul %2, %3, %cst_5 {dimension_numbers = #tpu.dot_dimension_numbers<[1], [0], [0], [1], [0, 0, 1, 1], [], []>} : vector<128x64xf32>, vector<64x8xf32>, vector<128x8xf32> -> vector<128x8xf32>
    %c0_6 = arith.constant 0 : index
    %c0_7 = arith.constant 0 : index
    %5 = vector.load %arg4[%c0_6, %c0_7] : memref<128x64xf32, #tpu.memory_space<vmem>>, vector<128x64xf32>
    tpu.vector_store %arg4[%c0_6, %c0_7], %2 {strides = array<i32>} : memref<128x64xf32, #tpu.memory_space<vmem>>, vector<128x64xf32>,
    %c0_8 = arith.constant 0 : index
    %c0_9 = arith.constant 0 : index
    %6 = vector.load %arg5[%c0_8, %c0_9] : memref<128x8xf32, #tpu.memory_space<vmem>>, vector<128x8xf32>
    tpu.vector_store %arg5[%c0_8, %c0_9], %4 {strides = array<i32>} : memref<128x8xf32, #tpu.memory_space<vmem>>, vector<128x8xf32>,
    return
  }
  func.func @transform_0(%arg0: i32) -> (i32, i32) {
    %c0_i32 = arith.constant 0 : i32
    %c0_i32_0 = arith.constant 0 : i32
    return %arg0, %c0_i32 : i32, i32
  }
  func.func @transform_1(%arg0: i32) -> (i32, i32) {
    %c0_i32 = arith.constant 0 : i32
    %c0_i32_0 = arith.constant 0 : i32
    %c0_i32_1 = arith.constant 0 : i32
    return %c0_i32, %c0_i32_0 : i32, i32
  }
  func.func @transform_2(%arg0: i32) -> (i32, i32) {
    %c0_i32 = arith.constant 0 : i32
    %c0_i32_0 = arith.constant 0 : i32
    %c0_i32_1 = arith.constant 0 : i32
    return %c0_i32, %c0_i32_0 : i32, i32
  }
  func.func @transform_3(%arg0: i32) -> (i32, i32) {
    %c0_i32 = arith.constant 0 : i32
    %c0_i32_0 = arith.constant 0 : i32
    return %arg0, %c0_i32 : i32, i32
  }
  func.func @transform_4(%arg0: i32) -> (i32, i32) {
    %c0_i32 = arith.constant 0 : i32
    %c0_i32_0 = arith.constant 0 : i32
    return %arg0, %c0_i32 : i32, i32
  }
}

</mosaic_0001>

<bundles_post_ra>
// kernel: tpu_custom_call.1
= control target key start
LH: loop header
LB: loop body
LE: loop exit
PB: predicated region body
PF: predicated region fallthrough
CT: control target
= control target key end

     0   :  { %s976_s15 = smov 0   ;;  %s1149_s0 = inlined_call_operand.vmem [shape: f32[256,16], index: 0, kind: input, shape index: {}]   ;;  %s1150_s1 = inlined_call_operand.vmem [shape: f32[16,64], index: 1, kind: input, shape index: {}]   ;;  %s1151_s2 = inlined_call_operand.vmem [shape: f32[64,8], index: 2, kind: input, shape index: {}]   ;;  %s1152_s3 = inlined_call_operand.vmem [shape: f32[256,64], index: 3, kind: output, shape index: {0}]   ;;  %s1153_s4 = inlined_call_operand.vmem [shape: f32[256,8], index: 4, kind: output, shape index: {1}]  }
   0x1 LB: > { %s752_s16 = sadd.s32 4294967295, %s949_s15   ;;  %p756_p0 = scmp.ge.s32.totalorder %s949_s15, 1  ;;  %s949_s15 = sphi %s976_s15, %s15_s15  }
   0x2   : > { %p166_p1 = scmp.lt.s32.totalorder %s949_s15, 3 }
   0x4   : > { %p167_p2 = pnand %p756_p0, %p166_p1 }
   0x5   : > { %v231_v0 = vld [vmem:[%s1150_s1] sm:$0xff] (!%p167_p2)  ;;  %v232_v1 = vld [vmem:[%s1150_s1 + $0x8] sm:$0xff] (!%p167_p2)  ;;  %s757_s21 = sshll.u32 (!%p167_p2), %s752_s16, 4  ;;  %v429_v5 = vld [vmem:[%s1151_s2 + $0x10] sm:$0xff] (!%p167_p2)  ;;  %vm233_vm0 = vcmask (!%p167_p2), 130048   ;;  %vm435_vm1 = vcmask (!%p167_p2), 523264  }
   0x6   : > { %170 = sbr.rel (%p167_p2) target bundleno = 474 (0x1da), region = 32  ;;  %v427_v2 = vld [vmem:[%s1151_s2] sm:$0xff] (!%p167_p2)  ;;  %v907_v3 = vpack.c.bf16 (!%p167_p2), %v232_v1, %v231_v0  ;;  %p198_p3 = scmp.lt.s32.totalorder (!%p167_p2), %s757_s21, 31  ;;  %v428_v4 = vld [vmem:[%s1151_s2 + $0x8] sm:$0xff] (!%p167_p2)  ;;  %v430_v6 = vld [vmem:[%s1151_s2 + $0x18] sm:$0xff] (!%p167_p2)  ;;  %vm645_vm2 = vcmask (!%p167_p2), 64512  }
   0x7   : > { %v911_v7 = vpack.c.bf16 (!%p167_p2), %v428_v4, %v427_v2  ;;  %v915_v8 = vpack.c.bf16 (!%p167_p2), %v430_v6, %v429_v5  ;;  %v431_v9 = vld [vmem:[%s1151_s2 + $0x20] sm:$0xff] (!%p167_p2)  ;;  %v432_v10 = vld [vmem:[%s1151_s2 + $0x28] sm:$0xff] (!%p167_p2)  ;;  %v433_v16 = vld [vmem:[%s1151_s2 + $0x30] sm:$0xff] (!%p167_p2) }
   0x8   : > { %908 = vmatprep.subr.bf16.mxu0 (!%p167_p2), %v907_v3  ;;  %v919_v14 = vpack.c.bf16 (!%p167_p2), %v432_v10, %v431_v9  ;;  %v434_v17 = vld [vmem:[%s1151_s2 + $0x38] sm:$0xff] (!%p167_p2) }
   0x9   : > { %910 = vmatpush3.bf16.msra.mxu0 (!%p167_p2), %v907_v3  ;;  %927 = vmatprep.subr.bf16.mxu1 (!%p167_p2), %v911_v7  ;;  %v923_v19 = vpack.c.bf16 (!%p167_p2), %v434_v17, %v433_v16 }
   0xa   : > { %912 = vmatprep.subr.bf16.mxu0 (!%p167_p2), %v911_v7  ;;  %931 = vmatpush3.bf16.msra.mxu1 (!%p167_p2), %v911_v7 }
   0xb   : > { %928 = vmatprep.subr.bf16.mxu1 (!%p167_p2), %v915_v8 }
   0xd   : > { %s1155_s21 = smov (!%p198_p3, %s757_s21), 31 }
   0xe   : > { %s1002_s30 = sshll.u32 %s1155_s21, 3  ;;  %932 = vmatpush3.bf16.msra.mxu1 %v915_v8 }
   0xf   : > { %s1008_s7 = scalar_lea.vmem %s1149_s0, %s1002_s30  ;;  %929 = vmatprep.subr.bf16.mxu1 %v919_v14  ;;  %s1058_s19 = scalar_lea.vmem %s1152_s3, %s1002_s30 }
  0x10   : > { %v215_v11 = vld [vmem:[%s1008_s7] sm:$0xff]  ;;  %v216_v12 = vld [vmem:[%s1008_s7 + $0x8] sm:$0xff]  ;;  %v217_v13 = vld [vmem:[%s1008_s7 + $0x10] sm:$0xff]  ;;  %s1112_s22 = scalar_lea.vmem %s1153_s4, %s1002_s30 }
  0x11   : > { %843 = vmatprep.mubr.msk.f32.mxu0 %vm233_vm0, %v215_v11  ;;  %v218_v15 = vld [vmem:[%s1008_s7 + $0x18] sm:$0xff]  ;;  %v219_v18 = vld [vmem:[%s1008_s7 + $0x20] sm:$0xff]  ;;  %v220_v20 = vld [vmem:[%s1008_s7 + $0x28] sm:$0xff] }
  0x12   : > { %844 = vmatmul.mubr.msk.f32.vlgmr.msra.gmra.mrb[0].mxu0 %vm233_vm0, %v216_v12  ;;  %933 = vmatpush3.bf16.msra.mxu1 %v919_v14  ;;  %v221_v21 = vld [vmem:[%s1008_s7 + $0x30] sm:$0xff]  ;;  %v222_v22 = vld [vmem:[%s1008_s7 + $0x38] sm:$0xff]  ;;  %v223_v23 = vld [vmem:[%s1008_s7 + $0x40] sm:$0xff] }
  0x13   : > { %846 = vmatprep.mubr.msk.f32.mxu0 %vm233_vm0, %v217_v13  ;;  %914 = vmatpush3.bf16.msra.mxu0 %v911_v7  ;;  %v224_v24 = vld [vmem:[%s1008_s7 + $0x48] sm:$0xff]  ;;  %v225_v25 = vld [vmem:[%s1008_s7 + $0x50] sm:$0xff]  ;;  %v226_v26 = vld [vmem:[%s1008_s7 + $0x58] sm:$0xff] }
  0x14   : > { %916 = vmatprep.subr.bf16.mxu0 %v915_v8  ;;  %930 = vmatprep.subr.bf16.mxu1 %v923_v19  ;;  %v227_v27 = vld [vmem:[%s1008_s7 + $0x60] sm:$0xff]  ;;  %v228_v28 = vld [vmem:[%s1008_s7 + $0x68] sm:$0xff]  ;;  %v229_v29 = vld [vmem:[%s1008_s7 + $0x70] sm:$0xff] }
  0x15   : > { %v230_v30 = vld [vmem:[%s1008_s7 + $0x78] sm:$0xff] }
  0x16   : > { %847 = vmatmul.mubr.msk.f32.gmra.mrb[2].mxu0 %vm233_vm0, %v218_v15  ;;  %934 = vmatpush3.bf16.msra.mxu1 %v923_v19 }
  0x17   : > { %849 = vmatprep.mubr.msk.f32.mxu0 %vm233_vm0, %v219_v18  ;;  %918 = vmatpush3.bf16.msra.mxu0 %v915_v8 }
  0x18   : > { %920 = vmatprep.subr.bf16.mxu0 %v919_v14 }
  0x1a   : > { %850 = vmatmul.mubr.msk.f32.gmra.mrb[4].mxu0 %vm233_vm0, %v220_v20 }
  0x1b   : > { %852 = vmatprep.mubr.msk.f32.mxu0 %vm233_vm0, %v221_v21  ;;  %922 = vmatpush3.bf16.msra.mxu0 %v919_v14 }
  0x1c   : > { %924 = vmatprep.subr.bf16.mxu0 %v923_v19 }
  0x1e   : > { %853 = vmatmul.mubr.msk.f32.gmra.mrb[6].mxu0 %vm233_vm0, %v222_v22 }
  0x1f   : > { %855 = vmatprep.mubr.msk.f32.mxu0 %vm233_vm0, %v223_v23  ;;  %926 = vmatpush3.bf16.msra.mxu0 %v923_v19 }
  0x22   : > { %856 = vmatmul.mubr.msk.f32.gmra.mrb[8].mxu0 %vm233_vm0, %v224_v24 }
  0x23   : > { %858 = vmatprep.mubr.msk.f32.mxu0 %vm233_vm0, %v225_v25 }
  0x26   : > { %859 = vmatmul.mubr.msk.f32.gmra.mrb[10].mxu0 %vm233_vm0, %v226_v26 }
  0x27   : > { %861 = vmatprep.mubr.msk.f32.mxu0 %vm233_vm0, %v227_v27 }
  0x2a   : > { %862 = vmatmul.mubr.msk.f32.gmra.mrb[12].mxu0 %vm233_vm0, %v228_v28 }
  0x2b   : > { %864 = vmatprep.mubr.msk.f32.mxu0 %vm233_vm0, %v229_v29 }
  0x2e   : > { %865 = vmatmul.mubr.msk.f32.gmra.mrb[14].mxu0 %vm233_vm0, %v230_v30 }
  0xe5   : > { %v845_v31 = vpop.f32.mrb[0].mxu0 }
  0xe6   : > { %630 = vst.msk [vmem:[%s1058_s19 + $0x8] sm:$0xff] %vm435_vm1, %v845_v31  ;;  %v348_v32 = vpop.f32.mrb[1].mxu0 }
  0xe7   : > { %629 = vst.msk [vmem:[%s1058_s19] sm:$0xff] %vm435_vm1, %v348_v32  ;;  %883 = vmatprep.mubr.msk.f32.mxu0 %vm435_vm1, %v348_v32 }
  0xe8   : > { %884 = vmatmul.mubr.msk.f32.vlgmr.msra.gmra.mrb[16].mxu0 %vm435_vm1, %v845_v31 }
  0xe9   : > { %v848_v33 = vpop.f32.mrb[2].mxu0 }
  0xea   : > { %632 = vst.msk [vmem:[%s1058_s19 + $0x18] sm:$0xff] %vm435_vm1, %v848_v33  ;;  %v358_v34 = vpop.f32.mrb[3].mxu0 }
  0xeb   : > { %631 = vst.msk [vmem:[%s1058_s19 + $0x10] sm:$0xff] %vm435_vm1, %v358_v34  ;;  %886 = vmatprep.mubr.msk.f32.mxu1 %vm435_vm1, %v358_v34 }
  0xec   : > { %887 = vmatmul.mubr.msk.f32.vlgmr.msra.gmra.mrb[0].mxu1 %vm435_vm1, %v848_v33 }
  0xed   : > { %v851_v35 = vpop.f32.mrb[4].mxu0 }
  0xee   : > { %634 = vst.msk [vmem:[%s1058_s19 + $0x28] sm:$0xff] %vm435_vm1, %v851_v35  ;;  %v368_v36 = vpop.f32.mrb[5].mxu0 }
  0xef   : > { %633 = vst.msk [vmem:[%s1058_s19 + $0x20] sm:$0xff] %vm435_vm1, %v368_v36  ;;  %889 = vmatprep.mubr.msk.f32.mxu1 %vm435_vm1, %v368_v36 }
  0xf0   : > { %890 = vmatmul.mubr.msk.f32.gmra.mrb[2].mxu1 %vm435_vm1, %v851_v35 }
  0xf1   : > { %v854_v37 = vpop.f32.mrb[6].mxu0 }
  0xf2   : > { %636 = vst.msk [vmem:[%s1058_s19 + $0x38] sm:$0xff] %vm435_vm1, %v854_v37  ;;  %v378_v38 = vpop.f32.mrb[7].mxu0 }
  0xf3   : > { %635 = vst.msk [vmem:[%s1058_s19 + $0x30] sm:$0xff] %vm435_vm1, %v378_v38  ;;  %892 = vmatprep.mubr.msk.f32.mxu1 %vm435_vm1, %v378_v38 }
  0xf4   : > { %893 = vmatmul.mubr.msk.f32.gmra.mrb[4].mxu1 %vm435_vm1, %v854_v37 }
  0xf5   : > { %v857_v39 = vpop.f32.mrb[8].mxu0 }
  0xf6   : > { %638 = vst.msk [vmem:[%s1058_s19 + $0x48] sm:$0xff] %vm435_vm1, %v857_v39  ;;  %v388_v40 = vpop.f32.mrb[9].mxu0 }
  0xf7   : > { %637 = vst.msk [vmem:[%s1058_s19 + $0x40] sm:$0xff] %vm435_vm1, %v388_v40  ;;  %895 = vmatprep.mubr.msk.f32.mxu1 %vm435_vm1, %v388_v40 }
  0xf8   : > { %896 = vmatmul.mubr.msk.f32.gmra.mrb[6].mxu1 %vm435_vm1, %v857_v39 }
  0xf9   : > { %v860_v41 = vpop.f32.mrb[10].mxu0 }
  0xfa   : > { %640 = vst.msk [vmem:[%s1058_s19 + $0x58] sm:$0xff] %vm435_vm1, %v860_v41  ;;  %v398_v42 = vpop.f32.mrb[11].mxu0 }
  0xfb   : > { %639 = vst.msk [vmem:[%s1058_s19 + $0x50] sm:$0xff] %vm435_vm1, %v398_v42  ;;  %898 = vmatprep.mubr.msk.f32.mxu1 %vm435_vm1, %v398_v42 }
  0xfc   : > { %899 = vmatmul.mubr.msk.f32.gmra.mrb[8].mxu1 %vm435_vm1, %v860_v41 }
  0xfd   : > { %v863_v43 = vpop.f32.mrb[12].mxu0 }
  0xfe   : > { %642 = vst.msk [vmem:[%s1058_s19 + $0x68] sm:$0xff] %vm435_vm1, %v863_v43  ;;  %v408_v44 = vpop.f32.mrb[13].mxu0 }
  0xff   : > { %641 = vst.msk [vmem:[%s1058_s19 + $0x60] sm:$0xff] %vm435_vm1, %v408_v44  ;;  %901 = vmatprep.mubr.msk.f32.mxu1 %vm435_vm1, %v408_v44 }
 0x100   : > { %902 = vmatmul.mubr.msk.f32.gmra.mrb[10].mxu1 %vm435_vm1, %v863_v43 }
 0x101   : > { %v866_v45 = vpop.f32.mrb[14].mxu0 }
 0x102   : > { %644 = vst.msk [vmem:[%s1058_s19 + $0x78] sm:$0xff] %vm435_vm1, %v866_v45  ;;  %v418_v46 = vpop.f32.mrb[15].mxu0 }
 0x103   : > { %643 = vst.msk [vmem:[%s1058_s19 + $0x70] sm:$0xff] %vm435_vm1, %v418_v46  ;;  %904 = vmatprep.mubr.msk.f32.mxu1 %vm435_vm1, %v418_v46 }
 0x104   : > { %905 = vmatmul.mubr.msk.f32.gmra.mrb[12].mxu1 %vm435_vm1, %v866_v45 }
 0x1bb   : > { %v885_v47 = vpop.f32.mrb[16].mxu0 }
 0x1bc   : > { %647 = vst.msk [vmem:[%s1112_s22 + $0x8] sm:$0xff] %vm645_vm2, %v885_v47  ;;  %v550_v48 = vpop.f32.mrb[17].mxu0 }
 0x1bd   : > { %646 = vst.msk [vmem:[%s1112_s22] sm:$0xff] %vm645_vm2, %v550_v48 }
 0x1bf   : > { %v888_v49 = vpop.f32.mrb[0].mxu1 }
 0x1c0   : > { %649 = vst.msk [vmem:[%s1112_s22 + $0x18] sm:$0xff] %vm645_vm2, %v888_v49  ;;  %v560_v50 = vpop.f32.mrb[1].mxu1 }
 0x1c1   : > { %648 = vst.msk [vmem:[%s1112_s22 + $0x10] sm:$0xff] %vm645_vm2, %v560_v50 }
 0x1c3   : > { %v891_v51 = vpop.f32.mrb[2].mxu1 }
 0x1c4   : > { %651 = vst.msk [vmem:[%s1112_s22 + $0x28] sm:$0xff] %vm645_vm2, %v891_v51  ;;  %v570_v52 = vpop.f32.mrb[3].mxu1 }
 0x1c5   : > { %650 = vst.msk [vmem:[%s1112_s22 + $0x20] sm:$0xff] %vm645_vm2, %v570_v52 }
 0x1c7   : > { %v894_v53 = vpop.f32.mrb[4].mxu1 }
 0x1c8   : > { %653 = vst.msk [vmem:[%s1112_s22 + $0x38] sm:$0xff] %vm645_vm2, %v894_v53  ;;  %v580_v54 = vpop.f32.mrb[5].mxu1 }
 0x1c9   : > { %652 = vst.msk [vmem:[%s1112_s22 + $0x30] sm:$0xff] %vm645_vm2, %v580_v54 }
 0x1cb   : > { %v897_v55 = vpop.f32.mrb[6].mxu1 }
 0x1cc   : > { %655 = vst.msk [vmem:[%s1112_s22 + $0x48] sm:$0xff] %vm645_vm2, %v897_v55  ;;  %v590_v56 = vpop.f32.mrb[7].mxu1 }
 0x1cd   : > { %654 = vst.msk [vmem:[%s1112_s22 + $0x40] sm:$0xff] %vm645_vm2, %v590_v56 }
 0x1cf   : > { %v900_v57 = vpop.f32.mrb[8].mxu1 }
 0x1d0   : > { %657 = vst.msk [vmem:[%s1112_s22 + $0x58] sm:$0xff] %vm645_vm2, %v900_v57  ;;  %v600_v58 = vpop.f32.mrb[9].mxu1 }
 0x1d1   : > { %656 = vst.msk [vmem:[%s1112_s22 + $0x50] sm:$0xff] %vm645_vm2, %v600_v58 }
 0x1d3   : > { %v903_v59 = vpop.f32.mrb[10].mxu1 }
 0x1d4   : > { %659 = vst.msk [vmem:[%s1112_s22 + $0x68] sm:$0xff] %vm645_vm2, %v903_v59  ;;  %v610_v60 = vpop.f32.mrb[11].mxu1 }
 0x1d5   : > { %658 = vst.msk [vmem:[%s1112_s22 + $0x60] sm:$0xff] %vm645_vm2, %v610_v60 }
 0x1d7   : > { %v906_v61 = vpop.f32.mrb[12].mxu1 }
 0x1d8   : > { %661 = vst.msk [vmem:[%s1112_s22 + $0x78] sm:$0xff] %vm645_vm2, %v906_v61  ;;  %v620_v62 = vpop.f32.mrb[13].mxu1 }
 0x1d9   : > { %660 = vst.msk [vmem:[%s1112_s22 + $0x70] sm:$0xff] %vm645_vm2, %v620_v62 }
 0x1da PF: > { %s15_s15 = sadd.s32 1, %s949_s15  }
 0x1db   : > { %p12_p4 = scmp.ge.s32.totalorder %s15_s15, 4  }
 0x1dd   :  { %14 = sbr.rel (!%p12_p4) target bundleno = 1 (0x1), region = 74 }

</bundles_post_ra>
